<compile_context>
chip_gen: v6e
topology: v6e:2x2x1
jax: 0.10.0
libtpu: 0.0.40
codegen_flags: <defaults>
</compile_context>

<pallas_src>
import functools

import jax
import jax.numpy as jnp
from jax.experimental import pallas as pl
from jax.experimental.pallas import tpu as pltpu


def _dice_partial_kernel(yt_ref, yp_ref, out_ref, *, n_valid, tile_rows, lanes):
    i = pl.program_id(0)
    base = i * (tile_rows * lanes)

    # In-kernel tail mask: global flat index < number of real elements.
    # Also zeroes any garbage in a partial trailing block, and uses a select
    # (not a multiply) so stray NaNs in padded regions cannot propagate.
    lin = (jax.lax.broadcasted_iota(jnp.int32, (tile_rows, lanes), 0) * lanes
           + jax.lax.broadcasted_iota(jnp.int32, (tile_rows, lanes), 1))
    valid = (base + lin) < n_valid

    yp = jnp.where(valid, jax.nn.sigmoid(yp_ref[...].astype(jnp.float32)), 0.0)
    yt = jnp.where(valid, yt_ref[...].astype(jnp.float32), 0.0)

    def fold(x):  # (tile_rows, lanes) -> (8, lanes): pure vreg adds (VALU).
        return jnp.sum(jnp.reshape(x, (tile_rows // 8, 8, lanes)), axis=0)

    out_ref[0, 0] = fold(yp * yt)   # intersection partial
    out_ref[0, 1] = fold(yp)        # sum(sigmoid(pred)) partial
    out_ref[0, 2] = fold(yt)        # sum(true) partial


def dice_loss2(y_true, y_pred, smooth=1.0, *, tile_rows=1024):
    """Pallas equivalent of DiceLoss2.forward(y_true, y_pred, smooth)."""
    assert y_true.size == y_pred.size
    n = y_true.size
    lanes = 128

    def _sublane_mult(dt):
        # f32 -> 8, bf16/f16 -> 16, int8/bool -> 32 sublane packing granule.
        return max(8, 32 // jnp.dtype(dt).itemsize)

    sub = max(_sublane_mult(y_true.dtype), _sublane_mult(y_pred.dtype))
    granule = sub * lanes
    n_pad = ((n + granule - 1) // granule) * granule
    rows = n_pad // lanes

    def prep(x):
        flat = jnp.reshape(x, (-1,))
        if n_pad != n:
            # Only taken for ragged sizes; the common lane-aligned case streams
            # the input with no extra HBM copy.  Padded zeros are masked
            # in-kernel (sigmoid(0) = 0.5 would otherwise pollute the sums).
            flat = jnp.pad(flat, (0, n_pad - n))
        return jnp.reshape(flat, (rows, lanes))

    yt2 = prep(y_true)
    yp2 = prep(y_pred)

    tr = min(int(tile_rows), rows)
    tr = max(sub, (tr // sub) * sub)      # keep sublane-packing alignment
    num_tiles = pl.cdiv(rows, tr)

    kernel = functools.partial(
        _dice_partial_kernel, n_valid=n, tile_rows=tr, lanes=lanes)

    partials = pl.pallas_call(
        kernel,
        out_shape=jax.ShapeDtypeStruct((num_tiles, 3, 8, lanes), jnp.float32),
        grid=(num_tiles,),
        in_specs=[pl.BlockSpec((tr, lanes), lambda i: (i, 0)),
                  pl.BlockSpec((tr, lanes), lambda i: (i, 0))],
        out_specs=pl.BlockSpec((1, 3, 8, lanes), lambda i: (i, 0, 0, 0)),
        compiler_params=pltpu.CompilerParams(
            dimension_semantics=("parallel",),
        ),
    )(yt2, yp2)

    sums = jnp.sum(partials, axis=(0, 2, 3))   # [intersection, sum_pred, sum_true]
    smooth = jnp.float32(smooth)
    dice = (2.0 * sums[0] + smooth) / (sums[1] + sums[2] + smooth)
    return 1.0 - dice


def _reference(y_true, y_pred, smooth=1.0):
    yp = jax.nn.sigmoid(y_pred.astype(jnp.float32)).reshape(-1)
    yt = y_true.astype(jnp.float32).reshape(-1)
    inter = jnp.sum(yp * yt)
    dice = (2.0 * inter + smooth) / (jnp.sum(yp) + jnp.sum(yt) + smooth)
    return 1.0 - dice


if __name__ == "__main__":
    key = jax.random.PRNGKey(0)
    k1, k2 = jax.random.split(key)
    # NCHW inputs, as the PyTorch module would receive them.
    y_pred = jax.random.normal(k1, (2, 4, 16, 16), dtype=jnp.float32)   # logits
    y_true = (jax.random.uniform(k2, (2, 4, 16, 16)) > 0.5).astype(jnp.float32)

    loss = dice_loss2(y_true, y_pred, smooth=1.0)
    loss = jax.block_until_ready(loss)

    ref = _reference(y_true, y_pred, smooth=1.0)
    assert jnp.allclose(loss, ref, rtol=1e-5, atol=1e-5), (loss, ref)

    # Also exercise a ragged (non-lane-aligned) size to hit the tail-mask path.
    k3, k4 = jax.random.split(k1)
    yp_r = jax.random.normal(k3, (3, 5, 7, 11), dtype=jnp.float32)
    yt_r = (jax.random.uniform(k4, (3, 5, 7, 11)) > 0.5).astype(jnp.float32)
    loss_r = jax.block_until_ready(dice_loss2(yt_r, yp_r, smooth=1.0))
    ref_r = _reference(yt_r, yp_r, smooth=1.0)
    assert jnp.allclose(loss_r, ref_r, rtol=1e-5, atol=1e-5), (loss_r, ref_r)

    print("KERNEL_OK")
</pallas_src>

<mosaic_0001>
module attributes {stable_mosaic.version = 11 : i64} {
  func.func @_dice_partial_kernel(%arg0: i32, %arg1: memref<16x128xf32, #tpu.memory_space<vmem>>, %arg2: memref<16x128xf32, #tpu.memory_space<vmem>>, %arg3: memref<1x3x8x128xf32, #tpu.memory_space<vmem>>) attributes {dimension_semantics = [#tpu.dimension_semantics<parallel>], iteration_bounds = array<i64: 1>, scalar_prefetch = 0 : i64, scratch_operands = 0 : i64, tpu.core_type = #tpu.core_type<tc>, window_params = [{transform_indices = @transform_0, window_bounds = array<i64: 16, 128>}, {transform_indices = @transform_1, window_bounds = array<i64: 16, 128>}, {transform_indices = @transform_2, window_bounds = array<i64: 1, 3, 8, 128>}]} {
    %c2048_i32 = arith.constant 2048 : i32
    %0 = arith.muli %arg0, %c2048_i32 : i32
    %1 = tpu.iota {dimensions = array<i32: 0>} : vector<16x128xi32>
    %c128_i32 = arith.constant 128 : i32
    %2 = vector.broadcast %c128_i32 : i32 to vector<16x128xi32>
    %3 = arith.muli %1, %2 : vector<16x128xi32>
    %4 = tpu.iota {dimensions = array<i32: 1>} : vector<16x128xi32>
    %5 = arith.addi %3, %4 : vector<16x128xi32>
    %6 = vector.broadcast %0 : i32 to vector<16x128xi32>
    %7 = arith.addi %6, %5 : vector<16x128xi32>
    %c2048_i32_0 = arith.constant 2048 : i32
    %8 = vector.broadcast %c2048_i32_0 : i32 to vector<16x128xi32>
    %9 = arith.cmpi slt, %7, %8 : vector<16x128xi32>
    %c0 = arith.constant 0 : index
    %c0_1 = arith.constant 0 : index
    %10 = vector.load %arg2[%c0, %c0_1] : memref<16x128xf32, #tpu.memory_space<vmem>>, vector<16x128xf32>
    %11 = arith.negf %10 : vector<16x128xf32>
    %12 = math.exp %11 : vector<16x128xf32>
    %cst = arith.constant 1.000000e+00 : f32
    %13 = vector.broadcast %cst : f32 to vector<16x128xf32>
    %14 = arith.addf %13, %12 : vector<16x128xf32>
    %15 = arith.divf %13, %14 : vector<16x128xf32>
    %cst_2 = arith.constant 0.000000e+00 : f32
    %16 = vector.broadcast %cst_2 : f32 to vector<16x128xf32>
    %17 = arith.select %9, %15, %16 : vector<16x128xi1>, vector<16x128xf32>
    %c0_3 = arith.constant 0 : index
    %c0_4 = arith.constant 0 : index
    %18 = vector.load %arg1[%c0_3, %c0_4] : memref<16x128xf32, #tpu.memory_space<vmem>>, vector<16x128xf32>
    %cst_5 = arith.constant 0.000000e+00 : f32
    %19 = vector.broadcast %cst_5 : f32 to vector<16x128xf32>
    %20 = arith.select %9, %18, %19 : vector<16x128xi1>, vector<16x128xf32>
    %21 = arith.mulf %17, %20 : vector<16x128xf32>
    %22 = vector.shape_cast %21 : vector<16x128xf32> to vector<2x8x128xf32>
    %cst_6 = arith.constant dense<0.000000e+00> : vector<8x128xf32>
    %23 = vector.multi_reduction <add>, %22, %cst_6 [0] : vector<2x8x128xf32> to vector<8x128xf32>
    %c0_7 = arith.constant 0 : index
    %c0_8 = arith.constant 0 : index
    %c0_9 = arith.constant 0 : index
    %c0_10 = arith.constant 0 : index
    %24 = vector.load %arg3[%c0_7, %c0_8, %c0_9, %c0_10] : memref<1x3x8x128xf32, #tpu.memory_space<vmem>>, vector<1x1x8x128xf32>
    %25 = vector.shape_cast %24 : vector<1x1x8x128xf32> to vector<8x128xf32>
    %26 = vector.shape_cast %23 : vector<8x128xf32> to vector<1x1x8x128xf32>
    tpu.vector_store %arg3[%c0_7, %c0_8, %c0_9, %c0_10], %26 {strides = array<i32>} : memref<1x3x8x128xf32, #tpu.memory_space<vmem>>, vector<1x1x8x128xf32>,
    %27 = vector.shape_cast %17 : vector<16x128xf32> to vector<2x8x128xf32>
    %cst_11 = arith.constant dense<0.000000e+00> : vector<8x128xf32>
    %28 = vector.multi_reduction <add>, %27, %cst_11 [0] : vector<2x8x128xf32> to vector<8x128xf32>
    %c0_12 = arith.constant 0 : index
    %c1 = arith.constant 1 : index
    %c0_13 = arith.constant 0 : index
    %c0_14 = arith.constant 0 : index
    %29 = vector.load %arg3[%c0_12, %c1, %c0_13, %c0_14] : memref<1x3x8x128xf32, #tpu.memory_space<vmem>>, vector<1x1x8x128xf32>
    %30 = vector.shape_cast %29 : vector<1x1x8x128xf32> to vector<8x128xf32>
    %31 = vector.shape_cast %28 : vector<8x128xf32> to vector<1x1x8x128xf32>
    tpu.vector_store %arg3[%c0_12, %c1, %c0_13, %c0_14], %31 {strides = array<i32>} : memref<1x3x8x128xf32, #tpu.memory_space<vmem>>, vector<1x1x8x128xf32>,
    %32 = vector.shape_cast %20 : vector<16x128xf32> to vector<2x8x128xf32>
    %cst_15 = arith.constant dense<0.000000e+00> : vector<8x128xf32>
    %33 = vector.multi_reduction <add>, %32, %cst_15 [0] : vector<2x8x128xf32> to vector<8x128xf32>
    %c0_16 = arith.constant 0 : index
    %c2 = arith.constant 2 : index
    %c0_17 = arith.constant 0 : index
    %c0_18 = arith.constant 0 : index
    %34 = vector.load %arg3[%c0_16, %c2, %c0_17, %c0_18] : memref<1x3x8x128xf32, #tpu.memory_space<vmem>>, vector<1x1x8x128xf32>
    %35 = vector.shape_cast %34 : vector<1x1x8x128xf32> to vector<8x128xf32>
    %36 = vector.shape_cast %33 : vector<8x128xf32> to vector<1x1x8x128xf32>
    tpu.vector_store %arg3[%c0_16, %c2, %c0_17, %c0_18], %36 {strides = array<i32>} : memref<1x3x8x128xf32, #tpu.memory_space<vmem>>, vector<1x1x8x128xf32>,
    return
  }
  func.func @transform_0(%arg0: i32) -> (i32, i32) {
    %c0_i32 = arith.constant 0 : i32
    %c0_i32_0 = arith.constant 0 : i32
    return %arg0, %c0_i32 : i32, i32
  }
  func.func @transform_1(%arg0: i32) -> (i32, i32) {
    %c0_i32 = arith.constant 0 : i32
    %c0_i32_0 = arith.constant 0 : i32
    return %arg0, %c0_i32 : i32, i32
  }
  func.func @transform_2(%arg0: i32) -> (i32, i32, i32, i32) {
    %c0_i32 = arith.constant 0 : i32
    %c0_i32_0 = arith.constant 0 : i32
    %c0_i32_1 = arith.constant 0 : i32
    %c0_i32_2 = arith.constant 0 : i32
    return %arg0, %c0_i32, %c0_i32_0, %c0_i32_1 : i32, i32, i32, i32
  }
}

</mosaic_0001>

<bundles_post_ra>
// kernel: tpu_custom_call.1
= control target key start
LH: loop header
LB: loop body
LE: loop exit
PB: predicated region body
PF: predicated region fallthrough
CT: control target
= control target key end

     0   :  { %7 = vsyncpa [#allocation3], 0  ;;  %s226_s0 = inlined_call_operand.hbm [shape: f32[16,128], index: 0, kind: input, shape index: {}]   ;;  %s227_s1 = inlined_call_operand.hbm [shape: f32[16,128], index: 1, kind: input, shape index: {}]   ;;  %s228_s2 = inlined_call_operand.hbm [shape: f32[1,3,8,128], index: 2, kind: output, shape index: {}]  }
   0x1   :  { %8 = vsyncpa [#allocation6], 0 }
   0x2   :  { %9 = vsyncpa [#allocation4], 0  ;;  %s184_s9 = smov [#allocation2]  }
   0x3   :  { %s15_s10 = sshll.u32 %s184_s9, 4  ;;  %s16_s10 = int_to_ptr.vmem [resolvable:$true] %s15_s10 }
   0x4   :  { %s126_s11 = scalar_lea.vmem %s16_s10, 256  ;;  %p131_p1 = scmp.lt.s32.totalorder %s16_s10, %s16_s10 }
   0x5   :  { %p127_p0 = scmp.ne.s32.totalorder %s16_s10, %s126_s11  ;;  %p132_p2 = scmp.lt.s32.totalorder %s126_s11, %s126_s11 }
   0x7   :  { %p133_p3 = por %p132_p2, %p131_p1 }
   0x9   :  { %p134_p4 = pnand %p133_p3, %p127_p0 }
   0xb   :  { %137 = shalt.err (!%p134_p4)
}
   0xc   :  { %s185_s12 = smov 128   ;;  %s186_s13 = smov 8  }
   0xd   :  { %21 = dma.hbm_to_vmem [thread:$0]  %s226_s0, 256, %s16_s10, [#allocation3], %s185_s12, %s185_s12, %s186_s13  }
   0xe   :  { %s187_s16 = smov [#allocation5]  }
   0xf   :  { %s27_s17 = sshll.u32 %s187_s16, 4  ;;  %s28_s17 = int_to_ptr.vmem [resolvable:$true] %s27_s17 }
  0x10   :  { %s146_s18 = scalar_lea.vmem %s28_s17, 256  ;;  %p151_p6 = scmp.lt.s32.totalorder %s28_s17, %s28_s17 }
  0x11   :  { %p147_p5 = scmp.ne.s32.totalorder %s28_s17, %s146_s18  ;;  %p152_p7 = scmp.lt.s32.totalorder %s146_s18, %s146_s18 }
  0x13   :  { %p153_p8 = por %p152_p7, %p151_p6 }
  0x15   :  { %p154_p9 = pnand %p153_p8, %p147_p5 }
  0x17   :  { %157 = shalt.err (!%p154_p9)
}
  0x18   :  { %33 = dma.hbm_to_vmem [thread:$0]  %s227_s1, 256, %s28_s17, [#allocation6], %s185_s12, %s185_s12, %s186_s13  }
  0x19   :  { %178 = dma.done.wait [#allocation3], 256  }
  0x1a   :  { %179 = vsyncadd [#allocation3], 4294967040 }
  0x1b   :  { %180 = dma.done.wait [#allocation6], 256  }
  0x1c   :  { %181 = vsyncadd [#allocation6], 4294967040  ;;  %v41_v0 = vlaneseq  ;;  %v55_v7 = vld [vmem:[#allocation5] sm:$0xff]  ;;  %v56_v8 = vld [vmem:[#allocation5 + $0x8] sm:$0xff]  ;;  %s188_s0 = smov [#allocation7]  }
  0x1d   :  { %v71_v9 = vld [vmem:[#allocation2] sm:$0xff]  ;;  %v103_v11 = vmul.f32 -1.442695, %v55_v7  ;;  %v104_v12 = vmul.f32 -1.442695, %v56_v8  ;;  %v72_v13 = vld [vmem:[#allocation2 + $0x8] sm:$0xff] }
  0x1e   :  { %v42_v1 = vshrl.u32 %v41_v0, 7  ;;  %v47_v2 = vand.u32 127, %v41_v0  ;;  %s90_s1 = sshll.u32 %s188_s0, 4  ;;  %s91_s1 = int_to_ptr.vmem [resolvable:$true] %s90_s1 }
  0x1f   :  { %110 = vpow2.f32 %v103_v11  ;;  %s158_s21 = scalar_lea.vmem %s91_s1, 384  ;;  %p163_p11 = scmp.lt.s32.totalorder %s91_s1, %s91_s1 }
  0x20   :  { %v43_v3 = vadd.s32 8, %v42_v1  ;;  %v44_v4 = vmul.u32 128, %v42_v1  ;;  %112 = vpow2.f32 %v104_v12  ;;  %p159_p10 = scmp.ne.s32.totalorder %s91_s1, %s158_s21  ;;  %p164_p12 = scmp.lt.s32.totalorder %s158_s21, %s158_s21 }
  0x22   :  { %v45_v5 = vmul.u32 128, %v43_v3  ;;  %v48_v6 = vadd.s32 %v47_v2, %v44_v4  ;;  %p165_p13 = por %p164_p12, %p163_p11 }
  0x24   :  { %v49_v10 = vadd.s32 %v47_v2, %v45_v5  ;;  %vm53_vm0 = vcmp.lt.s32.totalorder %v48_v6, 2048  ;;  %p166_p0 = pnand %p165_p13, %p159_p10 }
  0x25   :  { %v73_v14 = vsel %vm53_vm0, %v71_v9, 0.0 }
  0x26   :  { %vm54_vm1 = vcmp.lt.s32.totalorder %v49_v10, 2048 }
  0x27   :  { %v74_v15 = vsel %vm54_vm1, %v72_v13, 0.0 }
  0x28   :  { %v82_v16 = vadd.f32 %v74_v15, %v73_v14 }
  0x2a   :  { %84 = vst [vmem:[#allocation7 + $0x10] sm:$0xff] %v82_v16 }
  0x2c   :  { %v111_v17 = vpop.eup %110 }
  0x2d   :  { %v113_v18 = vpop.eup %112  ;;  %v63_v19 = vadd.f32 1.0, %v111_v17 }
  0x2e   :  { %v64_v20 = vadd.f32 1.0, %v113_v18 }
  0x2f   :  { %114 = vrcp.f32 %v63_v19 }
  0x30   :  { %116 = vrcp.f32 %v64_v20 }
  0x3c   :  { %v115_v21 = vpop.eup %114 }
  0x3d   :  { %v117_v22 = vpop.eup %116  ;;  %v69_v23 = vsel %vm53_vm0, %v115_v21, 0.0 }
  0x3e   :  { %v70_v24 = vsel %vm54_vm1, %v117_v22, 0.0  ;;  %v75_v25 = vmul.f32 %v73_v14, %v69_v23 }
  0x3f   :  { %v76_v26 = vmul.f32 %v74_v15, %v70_v24  ;;  %v79_v27 = vadd.f32 %v70_v24, %v69_v23 }
  0x41   :  { %v77_v28 = vadd.f32 %v76_v26, %v75_v25  ;;  %81 = vst [vmem:[#allocation7 + $0x8] sm:$0xff] %v79_v27 }
  0x43   :  { %78 = vst [vmem:[#allocation7] sm:$0xff] %v77_v28 }
  0x44   :  { %169 = shalt.err (!%p166_p0)
}
  0x45   :  { %96 = dma.vmem_to_hbm [thread:$0]  %s91_s1, 384, %s228_s2, [#allocation4], %s185_s12, %s185_s12, %s186_s13  }
  0x46   :  { %182 = dma.done.wait [#allocation4], 384  }
  0x47   :  { %183 = vsyncadd [#allocation4], 4294966912 }
  0x48   :  { %100 = vsyncpa [#allocation3], 1 }
  0x49   :  { %101 = vsyncpa [#allocation6], 1 }
  0x4a   :  { %102 = vsyncpa [#allocation4], 1 }

</bundles_post_ra>
